<compile_context>
chip_gen: v6e
topology: v6e:2x2x1
jax: 0.10.0
libtpu: 0.0.40
codegen_flags: <defaults>
</compile_context>

<pallas_src>
import functools

import jax
import jax.numpy as jnp
from jax.experimental import pallas as pl
from jax.experimental.pallas import tpu as pltpu


def _conv_shift_gemm_kernel(w_ref, x_ref, b_ref, o_ref, *, kh_kw, w_pad, p_out):
    """In-kernel im2col via shift-and-add over the flattened padded image.

    w_ref: (T, C_out, C_in)  per-tap weight slices, T = KH*KW             (9, 8, 4)
    x_ref: (C_in, L_in)      channel-major flattened padded input         (4, 806)
    b_ref: (C_out, 1)        bias
    o_ref: (C_out, P_out)    lane-dense output slab (P_out % 128 == 0)    (8, 768)
    """
    acc = jnp.zeros(o_ref.shape, jnp.float32)
    for t, (kh, kw) in enumerate(kh_kw):
        s = kh * w_pad + kw                      # static lane shift for this tap
        x_tap = x_ref[:, pl.ds(s, p_out)]        # (C_in, P_out) shifted slice
        acc = acc + jnp.dot(w_ref[t], x_tap,     # (C_out, C_in) @ (C_in, P_out)
                            preferred_element_type=jnp.float32)
    # bias broadcast once, outside the tap loop (JAX does not CSE broadcasts)
    o_ref[...] = (acc + b_ref[...]).astype(o_ref.dtype)


def weight_decay_conv_forward(x_nchw, weight_oihw, bias, *, padding=1):
    """Forward of WeightDecay(nn.Conv2d(...)) == Conv2d forward (stride=1).

    x_nchw:      (N, C_in, H, W)        float32
    weight_oihw: (C_out, C_in, KH, KW)  float32  (PyTorch conv weight layout)
    bias:        (C_out,)               float32
    returns      (N, C_out, H_out, W_out) float32
    """
    N, C_in, H, W = x_nchw.shape
    C_out, C_in_w, KH, KW = weight_oihw.shape
    assert C_in_w == C_in
    # stride=1, dilation=1 geometry (matches the wrapped nn.Conv2d config).
    H_pad, W_pad = H + 2 * padding, W + 2 * padding
    H_out, W_out = H_pad - KH + 1, W_pad - KW + 1

    P = N * H_pad * W_pad                        # flattened padded grid (all anchors)
    max_shift = (KH - 1) * W_pad + (KW - 1)      # largest tap shift
    P_out = ((P + 127) // 128) * 128             # lane-dense output length (mult of 128)
    L_in = P_out + max_shift                     # every shifted slice stays in range

    # ---- wrapper-side layout plumbing: ~13 KB total, no im2col slab ----
    x_c = jnp.transpose(x_nchw, (1, 0, 2, 3))                        # (C_in, N, H, W)
    x_c = jnp.pad(x_c, ((0, 0), (0, 0),
                        (padding, padding), (padding, padding)))      # (C_in, N, H_pad, W_pad)
    x_flat = x_c.reshape(C_in, P)
    x_flat = jnp.pad(x_flat, ((0, 0), (0, L_in - P)))                 # (C_in, L_in)

    # per-tap weight slices: (KH*KW, C_out, C_in), sliced on the leading dim in-kernel
    w_taps = jnp.transpose(weight_oihw, (2, 3, 0, 1)).reshape(KH * KW, C_out, C_in)
    b2 = bias.reshape(C_out, 1)

    kernel = functools.partial(
        _conv_shift_gemm_kernel,
        kh_kw=tuple((kh, kw) for kh in range(KH) for kw in range(KW)),
        w_pad=W_pad, p_out=P_out)

    M_valid = N * H_out * W_out
    K_total = C_in * KH * KW
    cost = pl.CostEstimate(
        flops=2 * C_out * K_total * M_valid,
        transcendentals=0,
        bytes_accessed=4 * (C_in * L_in + KH * KW * C_out * C_in
                            + C_out + C_out * P_out))

    # ---- single-step Pallas call: everything fits in VMEM (KB-scale) ----
    # TODO(synk): if N/H/W scale past toy size, tile the M (anchor) axis with a
    # parallel grid (lane-dense 2k-8k chunks) to respect v7x's 64 MiB VMEM and
    # shard across its 2 TensorCores.
    out = pl.pallas_call(
        kernel,
        out_shape=jax.ShapeDtypeStruct((C_out, P_out), jnp.float32),
        in_specs=[
            pl.BlockSpec(memory_space=pltpu.MemorySpace.VMEM),
            pl.BlockSpec(memory_space=pltpu.MemorySpace.VMEM),
            pl.BlockSpec(memory_space=pltpu.MemorySpace.VMEM),
        ],
        out_specs=pl.BlockSpec(memory_space=pltpu.MemorySpace.VMEM),
        cost_estimate=cost,
    )(w_taps, x_flat, b2)

    # Extract valid anchors (h < H_out, w < W_out within each sample) and go back
    # to NCHW.  (A consumer that can eat the lane-dense slab could skip this.)
    y = out[:, :P].reshape(C_out, N, H_pad, W_pad)[:, :, :H_out, :W_out]
    return jnp.transpose(y, (1, 0, 2, 3))


# TODO(synk): WeightDecay's backward hook (writing weight_decay-based grads into
# param.grad) and the abstract `regularize` method have no forward-pass / Pallas
# equivalent; only the wrapped module's forward is implemented here.


if __name__ == "__main__":
    key = jax.random.PRNGKey(0)
    kx, kw, kb = jax.random.split(key, 3)

    N, C_in, H, W = 2, 4, 16, 16
    C_out, KH, KW = 8, 3, 3

    x = jax.random.normal(kx, (N, C_in, H, W), dtype=jnp.float32)
    fan_in = C_in * KH * KW
    weight = jax.random.normal(kw, (C_out, C_in, KH, KW),
                               dtype=jnp.float32) / jnp.sqrt(fan_in)
    bias = jax.random.normal(kb, (C_out,), dtype=jnp.float32) * 0.01

    out = weight_decay_conv_forward(x, weight, bias, padding=1)
    out = jax.block_until_ready(out)

    # Sanity check against XLA's conv (same NCHW/OIHW convention as PyTorch).
    ref = jax.lax.conv_general_dilated(
        x, weight, window_strides=(1, 1), padding=((1, 1), (1, 1)),
        dimension_numbers=("NCHW", "OIHW", "NCHW")) + bias[None, :, None, None]
    assert out.shape == (N, C_out, H, W)
    assert jnp.max(jnp.abs(out - ref)) < 1e-4

    print("KERNEL_OK")
</pallas_src>

<mosaic_0001>
module attributes {stable_mosaic.version = 11 : i64} {
  func.func @_conv_shift_gemm_kernel(%arg0: memref<9x8x4xf32, #tpu.memory_space<vmem>>, %arg1: memref<4x806xf32, #tpu.memory_space<vmem>>, %arg2: memref<8x1xf32, #tpu.memory_space<vmem>>, %arg3: memref<8x768xf32, #tpu.memory_space<vmem>>) attributes {dimension_semantics = [], scalar_prefetch = 0 : i64, scratch_operands = 0 : i64, tpu.core_type = #tpu.core_type<tc>} {
    %cst = arith.constant 0.000000e+00 : f32
    %0 = vector.broadcast %cst : f32 to vector<8x768xf32>
    %c0 = arith.constant 0 : index
    %c0_0 = arith.constant 0 : index
    %1 = vector.load %arg1[%c0, %c0_0] : memref<4x806xf32, #tpu.memory_space<vmem>>, vector<4x768xf32>
    %c0_1 = arith.constant 0 : index
    %c0_2 = arith.constant 0 : index
    %c0_3 = arith.constant 0 : index
    %2 = vector.load %arg0[%c0_1, %c0_2, %c0_3] : memref<9x8x4xf32, #tpu.memory_space<vmem>>, vector<1x8x4xf32>
    %3 = vector.shape_cast %2 : vector<1x8x4xf32> to vector<8x4xf32>
    %cst_4 = arith.constant dense<0.000000e+00> : vector<8x768xf32>
    %4 = tpu.matmul %3, %1, %cst_4 {dimension_numbers = #tpu.dot_dimension_numbers<[1], [0], [0], [1], [0, 0, 1, 1], [], []>} : vector<8x4xf32>, vector<4x768xf32>, vector<8x768xf32> -> vector<8x768xf32>
    %5 = arith.addf %0, %4 : vector<8x768xf32>
    %c0_5 = arith.constant 0 : index
    %c1 = arith.constant 1 : index
    %6 = vector.load %arg1[%c0_5, %c1] : memref<4x806xf32, #tpu.memory_space<vmem>>, vector<4x768xf32>
    %c1_6 = arith.constant 1 : index
    %c0_7 = arith.constant 0 : index
    %c0_8 = arith.constant 0 : index
    %7 = vector.load %arg0[%c1_6, %c0_7, %c0_8] : memref<9x8x4xf32, #tpu.memory_space<vmem>>, vector<1x8x4xf32>
    %8 = vector.shape_cast %7 : vector<1x8x4xf32> to vector<8x4xf32>
    %cst_9 = arith.constant dense<0.000000e+00> : vector<8x768xf32>
    %9 = tpu.matmul %8, %6, %cst_9 {dimension_numbers = #tpu.dot_dimension_numbers<[1], [0], [0], [1], [0, 0, 1, 1], [], []>} : vector<8x4xf32>, vector<4x768xf32>, vector<8x768xf32> -> vector<8x768xf32>
    %10 = arith.addf %5, %9 : vector<8x768xf32>
    %c0_10 = arith.constant 0 : index
    %c2 = arith.constant 2 : index
    %11 = vector.load %arg1[%c0_10, %c2] : memref<4x806xf32, #tpu.memory_space<vmem>>, vector<4x768xf32>
    %c2_11 = arith.constant 2 : index
    %c0_12 = arith.constant 0 : index
    %c0_13 = arith.constant 0 : index
    %12 = vector.load %arg0[%c2_11, %c0_12, %c0_13] : memref<9x8x4xf32, #tpu.memory_space<vmem>>, vector<1x8x4xf32>
    %13 = vector.shape_cast %12 : vector<1x8x4xf32> to vector<8x4xf32>
    %cst_14 = arith.constant dense<0.000000e+00> : vector<8x768xf32>
    %14 = tpu.matmul %13, %11, %cst_14 {dimension_numbers = #tpu.dot_dimension_numbers<[1], [0], [0], [1], [0, 0, 1, 1], [], []>} : vector<8x4xf32>, vector<4x768xf32>, vector<8x768xf32> -> vector<8x768xf32>
    %15 = arith.addf %10, %14 : vector<8x768xf32>
    %c0_15 = arith.constant 0 : index
    %c18 = arith.constant 18 : index
    %16 = vector.load %arg1[%c0_15, %c18] : memref<4x806xf32, #tpu.memory_space<vmem>>, vector<4x768xf32>
    %c3 = arith.constant 3 : index
    %c0_16 = arith.constant 0 : index
    %c0_17 = arith.constant 0 : index
    %17 = vector.load %arg0[%c3, %c0_16, %c0_17] : memref<9x8x4xf32, #tpu.memory_space<vmem>>, vector<1x8x4xf32>
    %18 = vector.shape_cast %17 : vector<1x8x4xf32> to vector<8x4xf32>
    %cst_18 = arith.constant dense<0.000000e+00> : vector<8x768xf32>
    %19 = tpu.matmul %18, %16, %cst_18 {dimension_numbers = #tpu.dot_dimension_numbers<[1], [0], [0], [1], [0, 0, 1, 1], [], []>} : vector<8x4xf32>, vector<4x768xf32>, vector<8x768xf32> -> vector<8x768xf32>
    %20 = arith.addf %15, %19 : vector<8x768xf32>
    %c0_19 = arith.constant 0 : index
    %c19 = arith.constant 19 : index
    %21 = vector.load %arg1[%c0_19, %c19] : memref<4x806xf32, #tpu.memory_space<vmem>>, vector<4x768xf32>
    %c4 = arith.constant 4 : index
    %c0_20 = arith.constant 0 : index
    %c0_21 = arith.constant 0 : index
    %22 = vector.load %arg0[%c4, %c0_20, %c0_21] : memref<9x8x4xf32, #tpu.memory_space<vmem>>, vector<1x8x4xf32>
    %23 = vector.shape_cast %22 : vector<1x8x4xf32> to vector<8x4xf32>
    %cst_22 = arith.constant dense<0.000000e+00> : vector<8x768xf32>
    %24 = tpu.matmul %23, %21, %cst_22 {dimension_numbers = #tpu.dot_dimension_numbers<[1], [0], [0], [1], [0, 0, 1, 1], [], []>} : vector<8x4xf32>, vector<4x768xf32>, vector<8x768xf32> -> vector<8x768xf32>
    %25 = arith.addf %20, %24 : vector<8x768xf32>
    %c0_23 = arith.constant 0 : index
    %c20 = arith.constant 20 : index
    %26 = vector.load %arg1[%c0_23, %c20] : memref<4x806xf32, #tpu.memory_space<vmem>>, vector<4x768xf32>
    %c5 = arith.constant 5 : index
    %c0_24 = arith.constant 0 : index
    %c0_25 = arith.constant 0 : index
    %27 = vector.load %arg0[%c5, %c0_24, %c0_25] : memref<9x8x4xf32, #tpu.memory_space<vmem>>, vector<1x8x4xf32>
    %28 = vector.shape_cast %27 : vector<1x8x4xf32> to vector<8x4xf32>
    %cst_26 = arith.constant dense<0.000000e+00> : vector<8x768xf32>
    %29 = tpu.matmul %28, %26, %cst_26 {dimension_numbers = #tpu.dot_dimension_numbers<[1], [0], [0], [1], [0, 0, 1, 1], [], []>} : vector<8x4xf32>, vector<4x768xf32>, vector<8x768xf32> -> vector<8x768xf32>
    %30 = arith.addf %25, %29 : vector<8x768xf32>
    %c0_27 = arith.constant 0 : index
    %c36 = arith.constant 36 : index
    %31 = vector.load %arg1[%c0_27, %c36] : memref<4x806xf32, #tpu.memory_space<vmem>>, vector<4x768xf32>
    %c6 = arith.constant 6 : index
    %c0_28 = arith.constant 0 : index
    %c0_29 = arith.constant 0 : index
    %32 = vector.load %arg0[%c6, %c0_28, %c0_29] : memref<9x8x4xf32, #tpu.memory_space<vmem>>, vector<1x8x4xf32>
    %33 = vector.shape_cast %32 : vector<1x8x4xf32> to vector<8x4xf32>
    %cst_30 = arith.constant dense<0.000000e+00> : vector<8x768xf32>
    %34 = tpu.matmul %33, %31, %cst_30 {dimension_numbers = #tpu.dot_dimension_numbers<[1], [0], [0], [1], [0, 0, 1, 1], [], []>} : vector<8x4xf32>, vector<4x768xf32>, vector<8x768xf32> -> vector<8x768xf32>
    %35 = arith.addf %30, %34 : vector<8x768xf32>
    %c0_31 = arith.constant 0 : index
    %c37 = arith.constant 37 : index
    %36 = vector.load %arg1[%c0_31, %c37] : memref<4x806xf32, #tpu.memory_space<vmem>>, vector<4x768xf32>
    %c7 = arith.constant 7 : index
    %c0_32 = arith.constant 0 : index
    %c0_33 = arith.constant 0 : index
    %37 = vector.load %arg0[%c7, %c0_32, %c0_33] : memref<9x8x4xf32, #tpu.memory_space<vmem>>, vector<1x8x4xf32>
    %38 = vector.shape_cast %37 : vector<1x8x4xf32> to vector<8x4xf32>
    %cst_34 = arith.constant dense<0.000000e+00> : vector<8x768xf32>
    %39 = tpu.matmul %38, %36, %cst_34 {dimension_numbers = #tpu.dot_dimension_numbers<[1], [0], [0], [1], [0, 0, 1, 1], [], []>} : vector<8x4xf32>, vector<4x768xf32>, vector<8x768xf32> -> vector<8x768xf32>
    %40 = arith.addf %35, %39 : vector<8x768xf32>
    %c0_35 = arith.constant 0 : index
    %c38 = arith.constant 38 : index
    %41 = vector.load %arg1[%c0_35, %c38] : memref<4x806xf32, #tpu.memory_space<vmem>>, vector<4x768xf32>
    %c8 = arith.constant 8 : index
    %c0_36 = arith.constant 0 : index
    %c0_37 = arith.constant 0 : index
    %42 = vector.load %arg0[%c8, %c0_36, %c0_37] : memref<9x8x4xf32, #tpu.memory_space<vmem>>, vector<1x8x4xf32>
    %43 = vector.shape_cast %42 : vector<1x8x4xf32> to vector<8x4xf32>
    %cst_38 = arith.constant dense<0.000000e+00> : vector<8x768xf32>
    %44 = tpu.matmul %43, %41, %cst_38 {dimension_numbers = #tpu.dot_dimension_numbers<[1], [0], [0], [1], [0, 0, 1, 1], [], []>} : vector<8x4xf32>, vector<4x768xf32>, vector<8x768xf32> -> vector<8x768xf32>
    %45 = arith.addf %40, %44 : vector<8x768xf32>
    %c0_39 = arith.constant 0 : index
    %c0_40 = arith.constant 0 : index
    %46 = vector.load %arg2[%c0_39, %c0_40] : memref<8x1xf32, #tpu.memory_space<vmem>>, vector<8x1xf32>
    %47 = vector.broadcast %46 : vector<8x1xf32> to vector<8x768xf32>
    %48 = arith.addf %45, %47 : vector<8x768xf32>
    %c0_41 = arith.constant 0 : index
    %c0_42 = arith.constant 0 : index
    %49 = vector.load %arg3[%c0_41, %c0_42] : memref<8x768xf32, #tpu.memory_space<vmem>>, vector<8x768xf32>
    tpu.vector_store %arg3[%c0_41, %c0_42], %48 {strides = array<i32>} : memref<8x768xf32, #tpu.memory_space<vmem>>, vector<8x768xf32>,
    return
  }
}

</mosaic_0001>

<bundles_post_ra>
// kernel: tpu_custom_call.1
= control target key start
LH: loop header
LB: loop body
LE: loop exit
PB: predicated region body
PF: predicated region fallthrough
CT: control target
= control target key end

     0   :  { %s2542_s16 = smov 127   ;;  %v2543_v6 = vmov 0.0   ;;  %s2867_s0 = inlined_call_operand.vmem [shape: f32[9,8,4], index: 0, kind: input, shape index: {}]   ;;  %s2868_s1 = inlined_call_operand.vmem [shape: f32[4,806], index: 1, kind: input, shape index: {}]   ;;  %s2869_s2 = inlined_call_operand.vmem [shape: f32[8,1], index: 2, kind: input, shape index: {}]   ;;  %s2870_s3 = inlined_call_operand.hbm [shape: f32[8,768], index: 3, kind: output, shape index: {}]  }
   0x1   :  { %v2576_v0 = vld [vmem:[%s2868_s1] sm:$0xff]  ;;  %v2581_v1 = vld [vmem:[%s2868_s1 + $0x8] sm:$0xff]  ;;  %v2595_v4 = vld [vmem:[%s2868_s1 + $0x10] sm:$0xff]  ;;  %131 = vmatprep.mubr.f32.mxu0 %v2543_v6 }
   0x2   :  { %29 = vrot.lane.b32.xlu1 %v2576_v0, %s2542_s16  ;;  %v2586_v2 = vcombine.high %v2576_v0, %v2576_v0  ;;  %v2590_v3 = vcombine.high %v2581_v1, %v2581_v1  ;;  %v2601_v5 = vcombine.high %v2595_v4, %v2595_v4 }
   0x4   :  { %31 = vrot.lane.b32.xlu0 %v2586_v2, %s2542_s16 }
   0x6   :  { %35 = vrot.lane.b32.xlu1 %v2590_v3, %s2542_s16 }
   0x7   :  { %8 = vsyncpa [#allocation3], 0  ;;  %202 = vmatprep.mubr.f32.mxu1 %v2543_v6  ;;  %v19_v7 = vld [vmem:[%s2868_s1 + $0x18] sm:$0xf]  ;;  %s2544_s21 = smov 126   ;;  %s2545_s24 = smov 110  }
   0x8   :  { %33 = vrot.lane.b32.xlu0 %v2581_v1, %s2542_s16  ;;  %v511_v8 = vld [vmem:[%s2868_s1 + $0x18] sm:$0xf]  ;;  %s2546_s27 = smov 109   ;;  %s2547_s30 = smov 108   ;;  %v2551_v14 = vmov 0   ;;  %v2384_v16 = vld [vmem:[%s2869_s2] sm:$0xff] }
   0x9   :  { %v779_v9 = vld [vmem:[%s2868_s1 + $0x18] sm:$0xf]  ;;  %s2548_s6 = smov 92   ;;  %s2549_s9 = smov 91   ;;  %2516 = vset.pattern.permute.xlu0 %v2551_v14  ;;  %vm43_vm0 = vcmask 1039360   ;;  %vm54_vm1 = vcmask 1043456  }
   0xa   :  { %39 = vrot.lane.b32.xlu1 %v2601_v5, %s2542_s16  ;;  %v1047_v10 = vld [vmem:[%s2868_s1 + $0x18] sm:$0xf]  ;;  %s2550_s12 = smov 90   ;;  %v2416_v22 = vld [vmem:[%s2867_s0 + $0x8] sm:$0xff]  ;;  %vm50_vm2 = vcmask 31744   ;;  %v18_v33 = vld [vmem:[%s2867_s0] sm:$0xff] }
   0xb   :  { %v1315_v11 = vld [vmem:[%s2868_s1 + $0x18] sm:$0xf]  ;;  %vm535_vm3 = vcmask 1031168   ;;  %v2435_v41 = vld [vmem:[%s2867_s0 + $0x10] sm:$0xff]  ;;  %vm803_vm4 = vcmask 900096   ;;  %vm1071_vm5 = vcmask 891904  }
   0xc   :  { %37 = vrot.lane.b32.xlu0 %v2595_v4, %s2542_s16  ;;  %v1583_v12 = vld [vmem:[%s2868_s1 + $0x18] sm:$0xf]  ;;  %vm1339_vm6 = vcmask 883712   ;;  %vm1607_vm7 = vcmask 752640   ;;  %vm1875_vm8 = vcmask 744448   ;;  %vm2143_vm9 = vcmask 736256  }
   0xd   :  { %v1851_v13 = vld [vmem:[%s2868_s1 + $0x18] sm:$0xf] }
   0xe   :  { %523 = vrot.lane.b32.xlu1 %v2586_v2, %s2544_s21  ;;  %v2119_v15 = vld [vmem:[%s2868_s1 + $0x18] sm:$0xf] }
   0xf   :  { %v2445_v54 = vld [vmem:[%s2867_s0 + $0x18] sm:$0xff] }
  0x10   :  { %41 = vrot.lane.b32.xlu0 %v19_v7, %s2542_s16 }
  0x12   :  { %521 = vrot.lane.b32.xlu1 %v2576_v0, %s2544_s21 }
  0x14   :  { %525 = vrot.lane.b32.xlu0 %v2581_v1, %s2544_s21 }
  0x16   :  { %529 = vrot.lane.b32.xlu1 %v2595_v4, %s2544_s21 }
  0x18   :  { %527 = vrot.lane.b32.xlu0 %v2590_v3, %s2544_s21 }
  0x1a   :  { %533 = vrot.lane.b32.xlu1 %v511_v8, %s2544_s21 }
  0x1c   :  { %531 = vrot.lane.b32.xlu0 %v2601_v5, %s2544_s21 }
  0x1e   :  { %793 = vrot.lane.b32.xlu1 %v2581_v1, %s2545_s24 }
  0x20   :  { %791 = vrot.lane.b32.xlu0 %v2586_v2, %s2545_s24 }
  0x22   :  { %797 = vrot.lane.b32.xlu1 %v2595_v4, %s2545_s24 }
  0x24   :  { %795 = vrot.lane.b32.xlu0 %v2590_v3, %s2545_s24 }
  0x26   :  { %799 = vrot.lane.b32.xlu1 %v2601_v5, %s2545_s24 }
  0x28   :  { %789 = vrot.lane.b32.xlu0 %v2576_v0, %s2545_s24 }
  0x2a   :  { %1059 = vrot.lane.b32.xlu1 %v2586_v2, %s2546_s27 }
  0x2c   :  { %801 = vrot.lane.b32.xlu0 %v779_v9, %s2545_s24 }
  0x2e   :  { %1057 = vrot.lane.b32.xlu1 %v2576_v0, %s2546_s27 }
  0x30   :  { %1061 = vrot.lane.b32.xlu0 %v2581_v1, %s2546_s27 }
  0x32   :  { %1065 = vrot.lane.b32.xlu1 %v2595_v4, %s2546_s27 }
  0x34   :  { %1063 = vrot.lane.b32.xlu0 %v2590_v3, %s2546_s27 }
  0x36   :  { %1069 = vrot.lane.b32.xlu1 %v1047_v10, %s2546_s27 }
  0x38   :  { %1067 = vrot.lane.b32.xlu0 %v2601_v5, %s2546_s27 }
  0x3a   :  { %1329 = vrot.lane.b32.xlu1 %v2581_v1, %s2547_s30 }
  0x3c   :  { %1327 = vrot.lane.b32.xlu0 %v2586_v2, %s2547_s30 }
  0x3e   :  { %1333 = vrot.lane.b32.xlu1 %v2595_v4, %s2547_s30 }
  0x40   :  { %1331 = vrot.lane.b32.xlu0 %v2590_v3, %s2547_s30 }
  0x42   :  { %1335 = vrot.lane.b32.xlu1 %v2601_v5, %s2547_s30 }
  0x44   :  { %1325 = vrot.lane.b32.xlu0 %v2576_v0, %s2547_s30 }
  0x46   :  { %1595 = vrot.lane.b32.xlu1 %v2586_v2, %s2548_s6 }
  0x48   :  { %1337 = vrot.lane.b32.xlu0 %v1315_v11, %s2547_s30 }
  0x4a   :  { %1593 = vrot.lane.b32.xlu1 %v2576_v0, %s2548_s6 }
  0x4c   :  { %1597 = vrot.lane.b32.xlu0 %v2581_v1, %s2548_s6 }
  0x4e   :  { %1601 = vrot.lane.b32.xlu1 %v2595_v4, %s2548_s6 }
  0x50   :  { %1599 = vrot.lane.b32.xlu0 %v2590_v3, %s2548_s6 }
  0x52   :  { %1605 = vrot.lane.b32.xlu1 %v1583_v12, %s2548_s6 }
  0x54   :  { %1603 = vrot.lane.b32.xlu0 %v2601_v5, %s2548_s6 }
  0x56   :  { %1865 = vrot.lane.b32.xlu1 %v2581_v1, %s2549_s9 }
  0x58   :  { %1863 = vrot.lane.b32.xlu0 %v2586_v2, %s2549_s9 }
  0x5a   :  { %1869 = vrot.lane.b32.xlu1 %v2595_v4, %s2549_s9 }
  0x5c   :  { %1867 = vrot.lane.b32.xlu0 %v2590_v3, %s2549_s9 }
  0x5e   :  { %1871 = vrot.lane.b32.xlu1 %v2601_v5, %s2549_s9 }
  0x60   :  { %1861 = vrot.lane.b32.xlu0 %v2576_v0, %s2549_s9 }
  0x62   :  { %2131 = vrot.lane.b32.xlu1 %v2586_v2, %s2550_s12 }
  0x64   :  { %1873 = vrot.lane.b32.xlu0 %v1851_v13, %s2549_s9 }
  0x66   :  { %2129 = vrot.lane.b32.xlu1 %v2576_v0, %s2550_s12 }
  0x68   :  { %2133 = vrot.lane.b32.xlu0 %v2581_v1, %s2550_s12 }
  0x6a   :  { %2137 = vrot.lane.b32.xlu1 %v2595_v4, %s2550_s12 }
  0x6c   :  { %2135 = vrot.lane.b32.xlu0 %v2590_v3, %s2550_s12 }
  0x6e   :  { %2141 = vrot.lane.b32.xlu1 %v2119_v15, %s2550_s12 }
  0x70   :  { %2139 = vrot.lane.b32.xlu0 %v2601_v5, %s2550_s12 }
  0x74   :  { %v30_v17 = vpop.permute.xlu1 %29  ;;  %2387 = vperm.xlu0 %2516, %v2384_v16  }
  0x76   :  { %v32_v18 = vpop.permute.xlu0 %31 }
  0x77   :  { %v44_v24 = vsel %vm43_vm0, %v30_v17, %v32_v18 }
  0x78   :  { %v36_v19 = vpop.permute.xlu1 %35 }
  0x7a   :  { %v34_v20 = vpop.permute.xlu0 %33 }
  0x7b   :  { %v45_v21 = vsel %vm43_vm0, %v32_v18, %v34_v20  ;;  %v46_v28 = vsel %vm43_vm0, %v34_v20, %v36_v19 }
  0x7c   :  { %v40_v23 = vpop.permute.xlu1 %39  ;;  %2417 = vmatprep.subr.msk.mxu0 %vm54_vm1, %v45_v21 }
  0x7d   :  { %2418 = vmatpush1.msk.msra.mxu0 %vm54_vm1, %v44_v24 }
  0x7e   :  { %v38_v25 = vpop.permute.xlu0 %37  ;;  %2419 = vmatmul.mubr.msk.f32.vlgmr.msra.gmra.mxu0 %vm50_vm2, %v2416_v22 }
  0x7f   :  { %v47_v26 = vsel %vm43_vm0, %v36_v19, %v38_v25  ;;  %273 = vmatprep.mubr.f32.mxu0 %v2543_v6  ;;  %v48_v31 = vsel %vm43_vm0, %v38_v25, %v40_v23  ;;  %v2465_v19 = vld [vmem:[%s2867_s0 + $0x28] sm:$0xff] }
  0x80   :  { %v524_v27 = vpop.permute.xlu1 %523  ;;  %2420 = vmatprep.subr.msk.mxu1 %vm54_vm1, %v47_v26 }
  0x81   :  { %2421 = vmatpush1.msk.msra.mxu1 %vm54_vm1, %v46_v28 }
  0x82   :  { %v42_v29 = vpop.permute.xlu0 %41  ;;  %2422 = vmatmul.mubr.msk.f32.vlgmr.msra.gmra.mxu1 %vm50_vm2, %v2416_v22  ;;  %2426 = vmatprep.subr.msk.mxu1 %vm54_vm1, %v2586_v2 }
  0x83   :  { %v49_v30 = vsel %vm43_vm0, %v40_v23, %v42_v29  ;;  %2427 = vmatpush1.msk.msra.mxu1 %vm54_vm1, %v2576_v0  ;;  %359 = vmatprep.mubr.f32.mxu1 %v2543_v6  ;;  %v2455_v0 = vld [vmem:[%s2867_s0 + $0x20] sm:$0xff]  ;;  %v2475_v29 = vld [vmem:[%s2867_s0 + $0x30] sm:$0xff] }
  0x84   :  { %v522_v32 = vpop.permute.xlu1 %521  ;;  %2423 = vmatprep.subr.msk.mxu0 %vm54_vm1, %v49_v30  ;;  %2432 = vmatprep.subr.msk.mxu1 %vm54_vm1, %v2601_v5 }
  0x85   :  { %2424 = vmatpush1.msk.msra.mxu0 %vm54_vm1, %v48_v31  ;;  %v536_v37 = vsel %vm535_vm3, %v522_v32, %v524_v27 }
  0x86   :  { %2425 = vmatmul.mubr.msk.f32.vlgmr.msra.gmra.mxu0 %vm50_vm2, %v2416_v22  ;;  %2429 = vmatprep.subr.msk.mxu0 %vm54_vm1, %v2590_v3  ;;  %v526_v34 = vpop.permute.xlu0 %525 }
  0x87   :  { %v537_v35 = vsel %vm535_vm3, %v524_v27, %v526_v34  ;;  %2430 = vmatpush1.msk.msra.mxu0 %vm54_vm1, %v2581_v1  ;;  %2428 = vmatmul.mubr.msk.f32.vlgmr.msra.gmra.mxu1 %vm50_vm2, %v18_v33 }
  0x88   :  { %v530_v36 = vpop.permute.xlu1 %529  ;;  %2436 = vmatprep.subr.msk.mxu0 %vm54_vm1, %v537_v35  ;;  %430 = vmatprep.mubr.f32.mxu0 %v2543_v6 }
  0x89   :  { %2433 = vmatpush1.msk.msra.mxu1 %vm54_vm1, %v2595_v4  ;;  %501 = vmatprep.mubr.f32.mxu1 %v2543_v6 }
  0x8a   :  { %2431 = vmatmul.mubr.msk.f32.vlgmr.msra.gmra.mxu0 %vm50_vm2, %v18_v33  ;;  %v528_v38 = vpop.permute.xlu0 %527 }
  0x8b   :  { %2437 = vmatpush1.msk.msra.mxu0 %vm54_vm1, %v536_v37  ;;  %v538_v39 = vsel %vm535_vm3, %v526_v34, %v528_v38  ;;  %v539_v40 = vsel %vm535_vm3, %v528_v38, %v530_v36  ;;  %2434 = vmatmul.mubr.msk.f32.vlgmr.msra.gmra.mxu1 %vm50_vm2, %v18_v33 }
  0x8c   :  { %v534_v42 = vpop.permute.xlu1 %533  ;;  %2439 = vmatprep.subr.msk.mxu1 %vm54_vm1, %v539_v40  ;;  %621 = vmatprep.mubr.f32.mxu0 %v2543_v6 }
  0x8d   :  { %2440 = vmatpush1.msk.msra.mxu1 %vm54_vm1, %v538_v39  ;;  %692 = vmatprep.mubr.f32.mxu1 %v2543_v6 }
  0x8e   :  { %v532_v43 = vpop.permute.xlu0 %531  ;;  %2438 = vmatmul.mubr.msk.f32.vlgmr.msra.gmra.mxu0 %vm50_vm2, %v2435_v41 }
  0x8f   :  { %v540_v44 = vsel %vm535_vm3, %v530_v36, %v532_v43  ;;  %v541_v45 = vsel %vm535_vm3, %v532_v43, %v534_v42  ;;  %763 = vmatprep.mubr.f32.mxu0 %v2543_v6  ;;  %2441 = vmatmul.mubr.msk.f32.vlgmr.msra.gmra.mxu1 %vm50_vm2, %v2435_v41 }
  0x90   :  { %v794_v46 = vpop.permute.xlu1 %793  ;;  %2442 = vmatprep.subr.msk.mxu0 %vm54_vm1, %v541_v45  ;;  %889 = vmatprep.mubr.f32.mxu1 %v2543_v6 }
  0x91   :  { %2443 = vmatpush1.msk.msra.mxu0 %vm54_vm1, %v540_v44 }
  0x92   :  { %v792_v47 = vpop.permute.xlu0 %791  ;;  %2444 = vmatmul.mubr.msk.f32.vlgmr.msra.gmra.mxu0 %vm50_vm2, %v2435_v41 }
  0x93   :  { %v805_v48 = vsel %vm803_vm4, %v792_v47, %v794_v46  ;;  %960 = vmatprep.mubr.f32.mxu0 %v2543_v6 }
  0x94   :  { %v798_v49 = vpop.permute.xlu1 %797  ;;  %2446 = vmatprep.subr.msk.mxu1 %vm54_vm1, %v805_v48 }
  0x96   :  { %v796_v50 = vpop.permute.xlu0 %795 }
  0x97   :  { %v806_v51 = vsel %vm803_vm4, %v794_v46, %v796_v50  ;;  %v807_v52 = vsel %vm803_vm4, %v796_v50, %v798_v49  ;;  %v2485_v46 = vld [vmem:[%s2867_s0 + $0x38] sm:$0xff] }
  0x98   :  { %v800_v53 = vpop.permute.xlu1 %799  ;;  %2449 = vmatprep.subr.msk.mxu0 %vm54_vm1, %v807_v52 }
  0x99   :  { %2450 = vmatpush1.msk.msra.mxu0 %vm54_vm1, %v806_v51  ;;  %v808_v60 = vsel %vm803_vm4, %v798_v49, %v800_v53 }
  0x9a   :  { %v790_v55 = vpop.permute.xlu0 %789  ;;  %2451 = vmatmul.mubr.msk.f32.vlgmr.msra.gmra.mxu0 %vm50_vm2, %v2445_v54 }
  0x9b   :  { %v804_v56 = vsel %vm803_vm4, %v790_v55, %v792_v47  ;;  %1157 = vmatprep.mubr.f32.mxu0 %v2543_v6 }
  0x9c   :  { %v1060_v57 = vpop.permute.xlu1 %1059  ;;  %2447 = vmatpush1.msk.msra.mxu1 %vm54_vm1, %v804_v56 }
  0x9d   :  { %2448 = vmatmul.mubr.msk.f32.vlgmr.msra.gmra.mxu1 %vm50_vm2, %v2445_v54 }
  0x9e   :  { %v802_v58 = vpop.permute.xlu0 %801  ;;  %1031 = vmatprep.mubr.f32.mxu1 %v2543_v6 }
  0x9f   :  { %v809_v59 = vsel %vm803_vm4, %v800_v53, %v802_v58 }
  0xa0   :  { %v1058_v61 = vpop.permute.xlu1 %1057  ;;  %2452 = vmatprep.subr.msk.mxu1 %vm54_vm1, %v809_v59 }
  0xa1   :  { %2453 = vmatpush1.msk.msra.mxu1 %vm54_vm1, %v808_v60  ;;  %v1072_v1 = vsel %vm1071_vm5, %v1058_v61, %v1060_v57 }
  0xa2   :  { %v1062_v62 = vpop.permute.xlu0 %1061  ;;  %2454 = vmatmul.mubr.msk.f32.vlgmr.msra.gmra.mxu1 %vm50_vm2, %v2445_v54 }
  0xa3   :  { %v1073_v63 = vsel %vm1071_vm5, %v1060_v57, %v1062_v62  ;;  %1228 = vmatprep.mubr.f32.mxu1 %v2543_v6  ;;  %v2495_v57 = vld [vmem:[%s2867_s0 + $0x40] sm:$0xff]  ;;  %s2552_s0 = smov [#allocation2]  }
  0xa4   :  { %v1066_v2 = vpop.permute.xlu1 %1065  ;;  %2456 = vmatprep.subr.msk.mxu0 %vm54_vm1, %v1073_v63  ;;  %s2408_s6 = sshll.u32 %s2552_s0, 4  ;;  %s2409_s6 = int_to_ptr.vmem [resolvable:$true] %s2408_s6 }
  0xa5   :  { %2457 = vmatpush1.msk.msra.mxu0 %vm54_vm1, %v1072_v1  ;;  %s2520_s7 = scalar_lea.vmem %s2409_s6, 768  ;;  %p2525_p1 = scmp.lt.s32.totalorder %s2409_s6, %s2409_s6 }
  0xa6   :  { %v1064_v3 = vpop.permute.xlu0 %1063  ;;  %2458 = vmatmul.mubr.msk.f32.vlgmr.msra.gmra.mxu0 %vm50_vm2, %v2455_v0  ;;  %p2521_p0 = scmp.ne.s32.totalorder %s2409_s6, %s2520_s7  ;;  %p2526_p2 = scmp.lt.s32.totalorder %s2520_s7, %s2520_s7 }
  0xa7   :  { %v1074_v4 = vsel %vm1071_vm5, %v1062_v62, %v1064_v3  ;;  %v1075_v5 = vsel %vm1071_vm5, %v1064_v3, %v1066_v2  ;;  %1299 = vmatprep.mubr.f32.mxu0 %v2543_v6 }
  0xa8   :  { %v1070_v7 = vpop.permute.xlu1 %1069  ;;  %2459 = vmatprep.subr.msk.mxu1 %vm54_vm1, %v1075_v5  ;;  %p2527_p3 = por %p2526_p2, %p2525_p1 }
  0xa9   :  { %2460 = vmatpush1.msk.msra.mxu1 %vm54_vm1, %v1074_v4 }
  0xaa   :  { %v1068_v8 = vpop.permute.xlu0 %1067  ;;  %2461 = vmatmul.mubr.msk.f32.vlgmr.msra.gmra.mxu1 %vm50_vm2, %v2455_v0  ;;  %p2528_p4 = pnand %p2527_p3, %p2521_p0 }
  0xab   :  { %v1076_v9 = vsel %vm1071_vm5, %v1066_v2, %v1068_v8  ;;  %v1077_v10 = vsel %vm1071_vm5, %v1068_v8, %v1070_v7  ;;  %1425 = vmatprep.mubr.f32.mxu1 %v2543_v6 }
  0xac   :  { %v1330_v11 = vpop.permute.xlu1 %1329  ;;  %2462 = vmatprep.subr.msk.mxu0 %vm54_vm1, %v1077_v10 }
  0xad   :  { %2463 = vmatpush1.msk.msra.mxu0 %vm54_vm1, %v1076_v9 }
  0xae   :  { %v1328_v12 = vpop.permute.xlu0 %1327  ;;  %2464 = vmatmul.mubr.msk.f32.vlgmr.msra.gmra.mxu0 %vm50_vm2, %v2455_v0 }
  0xaf   :  { %v1341_v13 = vsel %vm1339_vm6, %v1328_v12, %v1330_v11  ;;  %1496 = vmatprep.mubr.f32.mxu0 %v2543_v6 }
  0xb0   :  { %v1334_v14 = vpop.permute.xlu1 %1333  ;;  %2466 = vmatprep.subr.msk.mxu1 %vm54_vm1, %v1341_v13 }
  0xb2   :  { %v1332_v15 = vpop.permute.xlu0 %1331 }
  0xb3   :  { %v1342_v16 = vsel %vm1339_vm6, %v1330_v11, %v1332_v15  ;;  %v1343_v17 = vsel %vm1339_vm6, %v1332_v15, %v1334_v14 }
  0xb4   :  { %v1336_v18 = vpop.permute.xlu1 %1335  ;;  %2469 = vmatprep.subr.msk.mxu0 %vm54_vm1, %v1343_v17 }
  0xb5   :  { %2470 = vmatpush1.msk.msra.mxu0 %vm54_vm1, %v1342_v16  ;;  %v1344_v25 = vsel %vm1339_vm6, %v1334_v14, %v1336_v18 }
  0xb6   :  { %v1326_v20 = vpop.permute.xlu0 %1325  ;;  %2471 = vmatmul.mubr.msk.f32.vlgmr.msra.gmra.mxu0 %vm50_vm2, %v2465_v19 }
  0xb7   :  { %v1340_v21 = vsel %vm1339_vm6, %v1326_v20, %v1328_v12  ;;  %1693 = vmatprep.mubr.f32.mxu0 %v2543_v6 }
  0xb8   :  { %v1596_v22 = vpop.permute.xlu1 %1595  ;;  %2467 = vmatpush1.msk.msra.mxu1 %vm54_vm1, %v1340_v21 }
  0xb9   :  { %2468 = vmatmul.mubr.msk.f32.vlgmr.msra.gmra.mxu1 %vm50_vm2, %v2465_v19 }
  0xba   :  { %v1338_v23 = vpop.permute.xlu0 %1337  ;;  %1567 = vmatprep.mubr.f32.mxu1 %v2543_v6 }
  0xbb   :  { %v1345_v24 = vsel %vm1339_vm6, %v1336_v18, %v1338_v23 }
  0xbc   :  { %v1594_v26 = vpop.permute.xlu1 %1593  ;;  %2472 = vmatprep.subr.msk.mxu1 %vm54_vm1, %v1345_v24 }
  0xbd   :  { %2473 = vmatpush1.msk.msra.mxu1 %vm54_vm1, %v1344_v25  ;;  %v1608_v30 = vsel %vm1607_vm7, %v1594_v26, %v1596_v22 }
  0xbe   :  { %v1598_v27 = vpop.permute.xlu0 %1597  ;;  %2474 = vmatmul.mubr.msk.f32.vlgmr.msra.gmra.mxu1 %vm50_vm2, %v2465_v19 }
  0xbf   :  { %v1609_v28 = vsel %vm1607_vm7, %v1596_v22, %v1598_v27  ;;  %1764 = vmatprep.mubr.f32.mxu1 %v2543_v6 }
  0xc0   :  { %v1602_v31 = vpop.permute.xlu1 %1601  ;;  %2476 = vmatprep.subr.msk.mxu0 %vm54_vm1, %v1609_v28 }
  0xc1   :  { %2477 = vmatpush1.msk.msra.mxu0 %vm54_vm1, %v1608_v30 }
  0xc2   :  { %2478 = vmatmul.mubr.msk.f32.vlgmr.msra.gmra.mxu0 %vm50_vm2, %v2475_v29  ;;  %v1600_v32 = vpop.permute.xlu0 %1599 }
  0xc3   :  { %v1610_v33 = vsel %vm1607_vm7, %v1598_v27, %v1600_v32  ;;  %v1611_v34 = vsel %vm1607_vm7, %v1600_v32, %v1602_v31  ;;  %1835 = vmatprep.mubr.f32.mxu0 %v2543_v6 }
  0xc4   :  { %v1606_v35 = vpop.permute.xlu1 %1605  ;;  %2479 = vmatprep.subr.msk.mxu1 %vm54_vm1, %v1611_v34 }
  0xc5   :  { %2480 = vmatpush1.msk.msra.mxu1 %vm54_vm1, %v1610_v33 }
  0xc6   :  { %2481 = vmatmul.mubr.msk.f32.vlgmr.msra.gmra.mxu1 %vm50_vm2, %v2475_v29  ;;  %v1604_v36 = vpop.permute.xlu0 %1603 }
  0xc7   :  { %v1612_v37 = vsel %vm1607_vm7, %v1602_v31, %v1604_v36  ;;  %v1613_v38 = vsel %vm1607_vm7, %v1604_v36, %v1606_v35  ;;  %1961 = vmatprep.mubr.f32.mxu1 %v2543_v6 }
  0xc8   :  { %v1866_v39 = vpop.permute.xlu1 %1865  ;;  %2482 = vmatprep.subr.msk.mxu0 %vm54_vm1, %v1613_v38 }
  0xc9   :  { %2483 = vmatpush1.msk.msra.mxu0 %vm54_vm1, %v1612_v37 }
  0xca   :  { %2484 = vmatmul.mubr.msk.f32.vlgmr.msra.gmra.mxu0 %vm50_vm2, %v2475_v29  ;;  %v1864_v40 = vpop.permute.xlu0 %1863 }
  0xcb   :  { %v1877_v41 = vsel %vm1875_vm8, %v1864_v40, %v1866_v39  ;;  %2032 = vmatprep.mubr.f32.mxu0 %v2543_v6 }
  0xcc   :  { %v1870_v42 = vpop.permute.xlu1 %1869  ;;  %2486 = vmatprep.subr.msk.mxu1 %vm54_vm1, %v1877_v41 }
  0xce   :  { %v1868_v43 = vpop.permute.xlu0 %1867 }
  0xcf   :  { %v1878_v44 = vsel %vm1875_vm8, %v1866_v39, %v1868_v43  ;;  %v1879_v45 = vsel %vm1875_vm8, %v1868_v43, %v1870_v42 }
  0xd0   :  { %v1872_v47 = vpop.permute.xlu1 %1871  ;;  %2489 = vmatprep.subr.msk.mxu0 %vm54_vm1, %v1879_v45 }
  0xd1   :  { %2490 = vmatpush1.msk.msra.mxu0 %vm54_vm1, %v1878_v44  ;;  %v1880_v53 = vsel %vm1875_vm8, %v1870_v42, %v1872_v47 }
  0xd2   :  { %2491 = vmatmul.mubr.msk.f32.vlgmr.msra.gmra.mxu0 %vm50_vm2, %v2485_v46  ;;  %v1862_v48 = vpop.permute.xlu0 %1861 }
  0xd3   :  { %v1876_v49 = vsel %vm1875_vm8, %v1862_v48, %v1864_v40  ;;  %2229 = vmatprep.mubr.f32.mxu0 %v2543_v6 }
  0xd4   :  { %v2132_v50 = vpop.permute.xlu1 %2131  ;;  %2487 = vmatpush1.msk.msra.mxu1 %vm54_vm1, %v1876_v49 }
  0xd5   :  { %2488 = vmatmul.mubr.msk.f32.vlgmr.msra.gmra.mxu1 %vm50_vm2, %v2485_v46 }
  0xd6   :  { %v1874_v51 = vpop.permute.xlu0 %1873  ;;  %2103 = vmatprep.mubr.f32.mxu1 %v2543_v6 }
  0xd7   :  { %v1881_v52 = vsel %vm1875_vm8, %v1872_v47, %v1874_v51 }
  0xd8   :  { %v2130_v54 = vpop.permute.xlu1 %2129  ;;  %2492 = vmatprep.subr.msk.mxu1 %vm54_vm1, %v1881_v52 }
  0xd9   :  { %2493 = vmatpush1.msk.msra.mxu1 %vm54_vm1, %v1880_v53  ;;  %v2144_v58 = vsel %vm2143_vm9, %v2130_v54, %v2132_v50 }
  0xda   :  { %2494 = vmatmul.mubr.msk.f32.vlgmr.msra.gmra.mxu1 %vm50_vm2, %v2485_v46  ;;  %v2134_v55 = vpop.permute.xlu0 %2133 }
  0xdb   :  { %v2145_v56 = vsel %vm2143_vm9, %v2132_v50, %v2134_v55  ;;  %2300 = vmatprep.mubr.f32.mxu1 %v2543_v6 }
  0xdc   :  { %2496 = vmatprep.subr.msk.mxu0 %vm54_vm1, %v2145_v56  ;;  %v2138_v59 = vpop.permute.xlu1 %2137 }
  0xdd   :  { %2497 = vmatpush1.msk.msra.mxu0 %vm54_vm1, %v2144_v58 }
  0xde   :  { %2498 = vmatmul.mubr.msk.f32.vlgmr.msra.gmra.mxu0 %vm50_vm2, %v2495_v57  ;;  %v2136_v60 = vpop.permute.xlu0 %2135 }
  0xdf   :  { %v2146_v61 = vsel %vm2143_vm9, %v2134_v55, %v2136_v60  ;;  %v2147_v62 = vsel %vm2143_vm9, %v2136_v60, %v2138_v59  ;;  %2371 = vmatprep.mubr.f32.mxu0 %v2543_v6 }
  0xe0   :  { %2499 = vmatprep.subr.msk.mxu1 %vm54_vm1, %v2147_v62  ;;  %v2142_v63 = vpop.permute.xlu1 %2141 }
  0xe1   :  { %2500 = vmatpush1.msk.msra.mxu1 %vm54_vm1, %v2146_v61 }
  0xe2   :  { %2501 = vmatmul.mubr.msk.f32.vlgmr.msra.gmra.mxu1 %vm50_vm2, %v2495_v57  ;;  %v2140_v0 = vpop.permute.xlu0 %2139 }
  0xe3   :  { %v2148_v1 = vsel %vm2143_vm9, %v2138_v59, %v2140_v0  ;;  %v2149_v2 = vsel %vm2143_vm9, %v2140_v0, %v2142_v63 }
  0xe4   :  { %2502 = vmatprep.subr.msk.mxu0 %vm54_vm1, %v2149_v2 }
  0xe5   :  { %2503 = vmatpush1.msk.msra.mxu0 %vm54_vm1, %v2148_v1 }
  0xe6   :  { %2504 = vmatmul.mubr.msk.f32.vlgmr.msra.gmra.mxu0 %vm50_vm2, %v2495_v57 }
 0x13e   :  { %v133_v3 = vpop.f32.mrf.mxu0 }
 0x140   :  { %v135_v4 = vpop.f32.mrf.mxu0 }
 0x142   :  { %v204_v6 = vpop.f32.mrf.mxu1 }
 0x144   :  { %v206_v5 = vpop.f32.mrf.mxu1 }
 0x146   :  { %v275_v7 = vpop.f32.mrf.mxu0 }
 0x147   :  { %v361_v8 = vpop.f32.mrf.mxu1 }
 0x148   :  { %v277_v9 = vpop.f32.mrf.mxu0  ;;  %v362_v36 = vadd.f32 %v361_v8, %v133_v3 }
 0x149   :  { %v363_v10 = vpop.f32.mrf.mxu1 }
 0x14a   :  { %v432_v11 = vpop.f32.mrf.mxu0  ;;  %v364_v39 = vadd.f32 %v363_v10, %v135_v4 }
 0x14b   :  { %v503_v12 = vpop.f32.mrf.mxu1  ;;  %v433_v41 = vadd.f32 %v432_v11, %v204_v6 }
 0x14c   :  { %v434_v13 = vpop.f32.mrf.mxu0  ;;  %v504_v47 = vadd.f32 %v503_v12, %v275_v7 }
 0x14d   :  { %v505_v14 = vpop.f32.mrf.mxu1  ;;  %v435_v44 = vadd.f32 %v434_v13, %v206_v5 }
 0x14e   :  { %v623_v15 = vpop.f32.mrf.mxu0  ;;  %v506_v55 = vadd.f32 %v505_v14, %v277_v9 }
 0x14f   :  { %v694_v16 = vpop.f32.mrf.mxu1  ;;  %v770_v42 = vadd.f32 %v623_v15, %v362_v36 }
 0x150   :  { %v625_v17 = vpop.f32.mrf.mxu0  ;;  %v772_v49 = vadd.f32 %v694_v16, %v433_v41  ;;  %v2388_v16 = vpop.permute.xlu0 %2387 }
 0x151   :  { %v696_v18 = vpop.f32.mrf.mxu1  ;;  %v771_v45 = vadd.f32 %v625_v17, %v364_v39 }
 0x152   :  { %v765_v19 = vpop.f32.mrf.mxu0  ;;  %v773_v52 = vadd.f32 %v696_v18, %v435_v44 }
 0x153   :  { %v774_v56 = vadd.f32 %v765_v19, %v504_v47 }
 0x154   :  { %v767_v21 = vpop.f32.mrf.mxu0 }
 0x155   :  { %v775_v63 = vadd.f32 %v767_v21, %v506_v55 }
 0x15a   :  { %v962_v23 = vpop.f32.mrf.mxu0 }
 0x15b   :  { %v1040_v57 = vadd.f32 %v962_v23, %v772_v49 }
 0x15c   :  { %v964_v25 = vpop.f32.mrf.mxu0 }
 0x15d   :  { %v891_v20 = vpop.f32.mrf.mxu1  ;;  %v1041_v61 = vadd.f32 %v964_v25, %v773_v52 }
 0x15e   :  { %v1038_v50 = vadd.f32 %v891_v20, %v770_v42 }
 0x15f   :  { %v893_v22 = vpop.f32.mrf.mxu1 }
 0x160   :  { %v1039_v53 = vadd.f32 %v893_v22, %v771_v45 }
 0x162   :  { %v1033_v24 = vpop.f32.mrf.mxu1 }
 0x163   :  { %v1042_v0 = vadd.f32 %v1033_v24, %v774_v56 }
 0x164   :  { %v1035_v26 = vpop.f32.mrf.mxu1 }
 0x165   :  { %v1043_v8 = vadd.f32 %v1035_v26, %v775_v63 }
 0x166   :  { %v1159_v27 = vpop.f32.mrf.mxu0 }
 0x167   :  { %v1306_v58 = vadd.f32 %v1159_v27, %v1038_v50 }
 0x168   :  { %v1161_v29 = vpop.f32.mrf.mxu0 }
 0x169   :  { %v1307_v62 = vadd.f32 %v1161_v29, %v1039_v53 }
 0x16a   :  { %v1230_v28 = vpop.f32.mrf.mxu1 }
 0x16b   :  { %v1308_v3 = vadd.f32 %v1230_v28, %v1040_v57 }
 0x16c   :  { %v1232_v30 = vpop.f32.mrf.mxu1 }
 0x16d   :  { %v1309_v4 = vadd.f32 %v1232_v30, %v1041_v61 }
 0x16e   :  { %v1301_v31 = vpop.f32.mrf.mxu0 }
 0x16f   :  { %v1310_v10 = vadd.f32 %v1301_v31, %v1042_v0 }
 0x170   :  { %v1303_v33 = vpop.f32.mrf.mxu0 }
 0x171   :  { %v1311_v21 = vadd.f32 %v1303_v33, %v1043_v8 }
 0x176   :  { %v1498_v35 = vpop.f32.mrf.mxu0 }
 0x177   :  { %v1576_v12 = vadd.f32 %v1498_v35, %v1308_v3 }
 0x178   :  { %v1500_v38 = vpop.f32.mrf.mxu0 }
 0x179   :  { %v1427_v32 = vpop.f32.mrf.mxu1  ;;  %v1577_v17 = vadd.f32 %v1500_v38, %v1309_v4 }
 0x17a   :  { %v1574_v6 = vadd.f32 %v1427_v32, %v1306_v58 }
 0x17b   :  { %v1429_v34 = vpop.f32.mrf.mxu1 }
 0x17c   :  { %v1575_v5 = vadd.f32 %v1429_v34, %v1307_v62 }
 0x17e   :  { %v1569_v37 = vpop.f32.mrf.mxu1 }
 0x17f   :  { %v1578_v22 = vadd.f32 %v1569_v37, %v1310_v10 }
 0x180   :  { %v1571_v43 = vpop.f32.mrf.mxu1 }
 0x181   :  { %v1579_v29 = vadd.f32 %v1571_v43, %v1311_v21 }
 0x182   :  { %v1695_v40 = vpop.f32.mrf.mxu0 }
 0x183   :  { %v1842_v7 = vadd.f32 %v1695_v40, %v1574_v6 }
 0x184   :  { %v1697_v48 = vpop.f32.mrf.mxu0 }
 0x185   :  { %v1843_v13 = vadd.f32 %v1697_v48, %v1575_v5 }
 0x186   :  { %v1766_v46 = vpop.f32.mrf.mxu1 }
 0x187   :  { %v1844_v18 = vadd.f32 %v1766_v46, %v1576_v12 }
 0x188   :  { %v1768_v54 = vpop.f32.mrf.mxu1 }
 0x189   :  { %v1845_v25 = vadd.f32 %v1768_v54, %v1577_v17 }
 0x18a   :  { %v1837_v51 = vpop.f32.mrf.mxu0 }
 0x18b   :  { %v1846_v31 = vadd.f32 %v1837_v51, %v1578_v22 }
 0x18c   :  { %v1839_v60 = vpop.f32.mrf.mxu0 }
 0x18d   :  { %v1847_v38 = vadd.f32 %v1839_v60, %v1579_v29 }
 0x192   :  { %v2034_v1 = vpop.f32.mrf.mxu0 }
 0x193   :  { %v2112_v27 = vadd.f32 %v2034_v1, %v1844_v18 }
 0x194   :  { %v2036_v11 = vpop.f32.mrf.mxu0 }
 0x195   :  { %v1963_v59 = vpop.f32.mrf.mxu1  ;;  %v2113_v32 = vadd.f32 %v2036_v11, %v1845_v25 }
 0x196   :  { %v2110_v14 = vadd.f32 %v1963_v59, %v1842_v7 }
 0x197   :  { %v1965_v2 = vpop.f32.mrf.mxu1 }
 0x198   :  { %v2111_v19 = vadd.f32 %v1965_v2, %v1843_v13 }
 0x19a   :  { %v2105_v9 = vpop.f32.mrf.mxu1 }
 0x19b   :  { %v2114_v39 = vadd.f32 %v2105_v9, %v1846_v31 }
 0x19c   :  { %v2107_v23 = vpop.f32.mrf.mxu1 }
 0x19d   :  { %v2115_v41 = vadd.f32 %v2107_v23, %v1847_v38 }
 0x19e   :  { %v2231_v15 = vpop.f32.mrf.mxu0 }
 0x19f   :  { %v2378_v20 = vadd.f32 %v2231_v15, %v2110_v14 }
 0x1a0   :  { %v2233_v24 = vpop.f32.mrf.mxu0 }
 0x1a1   :  { %v2379_v28 = vadd.f32 %v2233_v24, %v2111_v19  ;;  %v2390_v26 = vadd.f32 %v2388_v16, %v2378_v20 }
 0x1a2   :  { %v2302_v30 = vpop.f32.mrf.mxu1 }
 0x1a3   :  { %v2391_v34 = vadd.f32 %v2388_v16, %v2379_v28  ;;  %2396 = vst [vmem:[#allocation2] sm:$0xff] %v2390_v26  ;;  %v2380_v35 = vadd.f32 %v2302_v30, %v2112_v27 }
 0x1a4   :  { %v2304_v36 = vpop.f32.mrf.mxu1 }
 0x1a5   :  { %2397 = vst [vmem:[#allocation2 + $0x8] sm:$0xff] %v2391_v34  ;;  %v2392_v40 = vadd.f32 %v2388_v16, %v2380_v35  ;;  %v2381_v33 = vadd.f32 %v2304_v36, %v2113_v32 }
 0x1a6   :  { %v2373_v37 = vpop.f32.mrf.mxu0 }
 0x1a7   :  { %2398 = vst [vmem:[#allocation2 + $0x10] sm:$0xff] %v2392_v40  ;;  %v2393_v42 = vadd.f32 %v2388_v16, %v2381_v33  ;;  %v2382_v44 = vadd.f32 %v2373_v37, %v2114_v39 }
 0x1a8   :  { %v2375_v45 = vpop.f32.mrf.mxu0 }
 0x1a9   :  { %2399 = vst [vmem:[#allocation2 + $0x18] sm:$0xff] %v2393_v42  ;;  %v2394_v43 = vadd.f32 %v2388_v16, %v2382_v44  ;;  %v2383_v46 = vadd.f32 %v2375_v45, %v2115_v41 }
 0x1ab   :  { %2400 = vst [vmem:[#allocation2 + $0x20] sm:$0xff] %v2394_v43  ;;  %v2395_v47 = vadd.f32 %v2388_v16, %v2383_v46 }
 0x1ad   :  { %2401 = vst [vmem:[#allocation2 + $0x28] sm:$0xff] %v2395_v47 }
 0x1ae   :  { %2531 = shalt.err (!%p2528_p4)
}
 0x1af   :  { %2411 = dma.vmem_to_hbm [thread:$0]  %s2409_s6, 768, %s2870_s3, [#allocation3]  }
 0x1b0   :  { %2540 = dma.done.wait [#allocation3], 768  }
 0x1b1   :  { %2541 = vsyncadd [#allocation3], 4294966528 }
 0x1b2   :  { %2415 = vsyncpa [#allocation3], 1 }

</bundles_post_ra>
